<compile_context>
chip_gen: v5e
topology: v5e:2x2
jax: 0.10.0
libtpu: 0.0.40
codegen_flags: <defaults>
</compile_context>

<pallas_src>
import functools
import math

import jax
import jax.numpy as jnp
from jax.experimental import pallas as pl
from jax.experimental.pallas import tpu as pltpu


_SQRT_2_OVER_PI = 0.7978845608028654


def _gelu_tanh(x):
    # TODO(synk): torch's F.gelu default is the exact erf GELU; this is the tanh
    # approximation (== F.gelu(approximate='tanh')), max deviation ~1e-3.
    return 0.5 * x * (1.0 + jnp.tanh(_SQRT_2_OVER_PI * (x + 0.044715 * x * x * x)))


def _round_up(a, b):
    return (a + b - 1) // b * b


def _default_vmem_limit_bytes():
    # ~75% of physical VMEM: ~96 MiB on v5e/v6e (128 MiB), ~48 MiB on v7x (64 MiB).
    try:
        cap = getattr(pltpu.get_tpu_info(), "vmem_capacity_bytes", None)
        if cap:
            return int(cap) * 3 // 4
    except Exception:
        pass
    return 64 * 1024 * 1024


def _ffn_kernel(seed_ref, x_ref, w1_ref, b1_ref, w2_ref, b2_ref, o_ref, acc_ref,
                *, dropout_rate, apply_dropout, num_f_tiles, f_total, tile_f,
                compute_dtype):
    # x_ref: (tm, E); w1_ref: (E, tf); b1_ref: (1, tf); w2_ref: (tf, E);
    # b2_ref: (1, E); o_ref: (tm, E); acc_ref: (tm, E) f32 scratch.
    f = pl.program_id(1)

    @pl.when(f == 0)
    def _init():
        acc_ref[...] = jnp.zeros_like(acc_ref)

    # h_tile = gelu(x @ W1[:, f*tf:(f+1)*tf] + b1[tile])  — bf16 MXU, f32 accumulate.
    x = x_ref[...].astype(compute_dtype)
    h = jnp.dot(x, w1_ref[...], preferred_element_type=jnp.float32) + b1_ref[...]
    h = _gelu_tanh(h)

    if apply_dropout and dropout_rate > 0.0:
        # Training-mode dropout: drop with prob p, scale survivors by 1/(1-p).
        # Seed mixes both grid ids so F tiles of a row block use independent streams.
        # TODO(synk): TPU hardware PRNG stream differs from torch RNG (values only).
        pltpu.prng_seed(seed_ref[0] + pl.program_id(0) * num_f_tiles + f)
        bits = pltpu.bitcast(pltpu.prng_random_bits(h.shape), jnp.uint32)
        threshold = jnp.uint32(min(int(dropout_rate * 4294967296.0), 4294967295))
        h = jnp.where(bits >= threshold,
                      h * jnp.float32(1.0 / (1.0 - dropout_rate)), jnp.float32(0.0))

    if f_total % tile_f != 0:
        # Last F tile is partial: zero the padded hidden columns so they cannot
        # contaminate the accumulator through the second matmul.
        col = jax.lax.broadcasted_iota(jnp.int32, h.shape, 1) + f * tile_f
        h = jnp.where(col < f_total, h, jnp.float32(0.0))

    # acc += h @ W2[tile, :]
    acc_ref[...] += jnp.dot(h.astype(compute_dtype), w2_ref[...],
                            preferred_element_type=jnp.float32)

    @pl.when(f == pl.num_programs(1) - 1)
    def _finalize():
        o_ref[...] = (acc_ref[...] + b2_ref[...]).astype(o_ref.dtype)


def positionwise_feed_forward(x, w1, b1, w2, b2, *, dropout_rate=0.1,
                              training=False, seed=0,
                              block_rows=256, block_f=512,
                              use_bf16_matmul=True, vmem_limit_bytes=None):
    """Pallas TPU implementation of PositionwiseFeedForward.forward.

    x: [..., E].  w1: [E, F], b1: [F], w2: [F, E], b2: [E]
    (w1/w2 are already transposed relative to torch's nn.Linear.weight).
    Returns an array with the same shape/dtype as x.
    """
    orig_shape = x.shape
    E = orig_shape[-1]
    F = w1.shape[1]
    assert w1.shape == (E, F) and w2.shape == (F, E)
    assert b1.shape == (F,) and b2.shape == (E,)

    x2d = x.reshape(-1, E)
    N = x2d.shape[0]

    compute_dtype = jnp.bfloat16 if use_bf16_matmul else jnp.float32

    # Row tile: multiple of the sublane packing for the activation dtype
    # (f32 -> 8, bf16 -> 16, int8/fp8 -> 32).
    sublane = max(8, 32 // jnp.dtype(x.dtype).itemsize)
    tm = min(_round_up(block_rows, sublane), _round_up(N, sublane))
    # Hidden tile: full F if small, otherwise a 128-aligned chunk (default 512 keeps
    # the v6e/v7x 256-wide MXU full; v5e only needs 128 alignment).
    tf = F if F <= block_f else _round_up(block_f, 128)

    grid_rows = -(-N // tm)
    grid_f = -(-F // tf)

    # Pre-cast weights once so HBM/VMEM traffic is halved (bf16) when streaming
    # W1/W2 tiles per row block; biases stay f32 (negligible size).
    w1_c = w1.astype(compute_dtype)
    w2_c = w2.astype(compute_dtype)
    b1_2d = b1.reshape(1, F).astype(jnp.float32)
    b2_2d = b2.reshape(1, E).astype(jnp.float32)
    seed_arr = jnp.array([seed], dtype=jnp.int32)

    kernel = functools.partial(
        _ffn_kernel,
        dropout_rate=float(dropout_rate),
        apply_dropout=bool(training),
        num_f_tiles=grid_f,
        f_total=F,
        tile_f=tf,
        compute_dtype=compute_dtype,
    )

    # index_map args: (row_tile, f_tile, seed_prefetch_ref)
    x_spec = pl.BlockSpec((tm, E), lambda i, f, s: (i, 0))    # resident across f
    w1_spec = pl.BlockSpec((E, tf), lambda i, f, s: (0, f))
    b1_spec = pl.BlockSpec((1, tf), lambda i, f, s: (0, f))
    w2_spec = pl.BlockSpec((tf, E), lambda i, f, s: (f, 0))
    b2_spec = pl.BlockSpec((1, E), lambda i, f, s: (0, 0))
    # NOTE: if E < 128 the output stores are masked (not lane-dense); real transformer
    # E (multiple of 128) is lane-dense automatically.
    o_spec = pl.BlockSpec((tm, E), lambda i, f, s: (i, 0))

    if vmem_limit_bytes is None:
        vmem_limit_bytes = _default_vmem_limit_bytes()

    wbytes = jnp.dtype(compute_dtype).itemsize
    cost = pl.CostEstimate(
        flops=4 * N * E * F,                               # two matmuls
        transcendentals=N * F,                             # tanh in GELU
        bytes_accessed=int(
            2 * N * E * jnp.dtype(x.dtype).itemsize        # x read + out write
            + grid_rows * 2 * E * F * wbytes               # W1+W2 streamed per row tile
            + grid_rows * (F + E) * 4),                    # biases
    )

    out2d = pl.pallas_call(
        kernel,
        out_shape=jax.ShapeDtypeStruct((N, E), x.dtype),
        grid_spec=pltpu.PrefetchScalarGridSpec(
            num_scalar_prefetch=1,
            grid=(grid_rows, grid_f),
            in_specs=[x_spec, w1_spec, b1_spec, w2_spec, b2_spec],
            out_specs=o_spec,
            scratch_shapes=[pltpu.VMEM((tm, E), jnp.float32)],
        ),
        compiler_params=pltpu.CompilerParams(
            dimension_semantics=("parallel", "arbitrary"),
            vmem_limit_bytes=int(vmem_limit_bytes),
        ),
        cost_estimate=cost,
    )(seed_arr, x2d, w1_c, b1_2d, w2_c, b2_2d)

    return out2d.reshape(orig_shape)


def _reference(x2d, w1, b1, w2, b2, compute_dtype=jnp.bfloat16):
    # Mirrors the kernel math: bf16 MXU operands, f32 accumulation, f32 GELU/bias.
    h = jnp.dot(x2d.astype(compute_dtype), w1.astype(compute_dtype),
                preferred_element_type=jnp.float32) + b1
    h = _gelu_tanh(h)
    return jnp.dot(h.astype(compute_dtype), w2.astype(compute_dtype),
                   preferred_element_type=jnp.float32) + b2


if __name__ == "__main__":
    B, S, E, F = 2, 16, 64, 128  # batch, seq, embed_dim, ff_dim
    key = jax.random.PRNGKey(0)
    kx, k1, kb1, k2, kb2 = jax.random.split(key, 5)

    x = jax.random.normal(kx, (B, S, E), dtype=jnp.float32)
    w1 = jax.random.normal(k1, (E, F), dtype=jnp.float32) * (1.0 / math.sqrt(E))
    b1 = jax.random.normal(kb1, (F,), dtype=jnp.float32) * 0.1
    w2 = jax.random.normal(k2, (F, E), dtype=jnp.float32) * (1.0 / math.sqrt(F))
    b2 = jax.random.normal(kb2, (E,), dtype=jnp.float32) * 0.1

    # eval-mode (dropout is identity), matching module.eval() semantics.
    out = positionwise_feed_forward(x, w1, b1, w2, b2,
                                    dropout_rate=0.1, training=False)
    out = jax.block_until_ready(out)

    ref = _reference(x.reshape(-1, E), w1, b1, w2, b2).reshape(x.shape)
    assert out.shape == x.shape, "shape mismatch"
    max_err = float(jnp.max(jnp.abs(out - ref)))
    assert jnp.allclose(out, ref, atol=2e-2, rtol=2e-2), (
        "output mismatch: max abs err = %g" % max_err)

    print("KERNEL_OK")
</pallas_src>

<mosaic_0001>
module attributes {stable_mosaic.version = 11 : i64} {
  func.func @_ffn_kernel(%arg0: i32, %arg1: i32, %arg2: memref<1xi32, #tpu.memory_space<smem>>, %arg3: memref<32x64xf32, #tpu.memory_space<vmem>>, %arg4: memref<64x128xbf16, #tpu.memory_space<vmem>>, %arg5: memref<1x128xf32, #tpu.memory_space<vmem>>, %arg6: memref<128x64xbf16, #tpu.memory_space<vmem>>, %arg7: memref<1x64xf32, #tpu.memory_space<vmem>>, %arg8: memref<32x64xf32, #tpu.memory_space<vmem>>, %arg9: memref<32x64xf32, #tpu.memory_space<vmem>>) attributes {dimension_semantics = [#tpu.dimension_semantics<parallel>, #tpu.dimension_semantics<arbitrary>], iteration_bounds = array<i64: 1, 1>, scalar_prefetch = 1 : i64, scratch_operands = 1 : i64, tpu.core_type = #tpu.core_type<tc>, window_params = [{transform_indices = @transform_0, window_bounds = array<i64: 32, 64>}, {transform_indices = @transform_1, window_bounds = array<i64: 64, 128>}, {transform_indices = @transform_2, window_bounds = array<i64: 1, 128>}, {transform_indices = @transform_3, window_bounds = array<i64: 128, 64>}, {pipeline_mode = #tpu.pipeline_mode<synchronous>, transform_indices = @transform_4, window_bounds = array<i64: 1, 64>}, {transform_indices = @transform_5, window_bounds = array<i64: 32, 64>}]} {
    %c0_i32 = arith.constant 0 : i32
    %0 = arith.cmpi eq, %arg1, %c0_i32 : i32
    %1 = arith.extui %0 : i1 to i32
    %c0_i32_0 = arith.constant 0 : i32
    %2 = arith.cmpi ne, %1, %c0_i32_0 : i32
    scf.if %2 {
      %cst_19 = arith.constant 0.000000e+00 : f32
      %32 = vector.broadcast %cst_19 : f32 to vector<32x64xf32>
      %c0_20 = arith.constant 0 : index
      %c0_21 = arith.constant 0 : index
      %33 = vector.load %arg9[%c0_20, %c0_21] : memref<32x64xf32, #tpu.memory_space<vmem>>, vector<32x64xf32>
      tpu.vector_store %arg9[%c0_20, %c0_21], %32 {strides = array<i32>} : memref<32x64xf32, #tpu.memory_space<vmem>>, vector<32x64xf32>,
    } else {
    }
    %c0 = arith.constant 0 : index
    %c0_1 = arith.constant 0 : index
    %3 = vector.load %arg3[%c0, %c0_1] : memref<32x64xf32, #tpu.memory_space<vmem>>, vector<32x64xf32>
    %4 = arith.truncf %3 : vector<32x64xf32> to vector<32x64xbf16>
    %c0_2 = arith.constant 0 : index
    %c0_3 = arith.constant 0 : index
    %5 = vector.load %arg4[%c0_2, %c0_3] : memref<64x128xbf16, #tpu.memory_space<vmem>>, vector<64x128xbf16>
    %cst = arith.constant dense<0.000000e+00> : vector<32x128xf32>
    %6 = tpu.matmul %4, %5, %cst {dimension_numbers = #tpu.dot_dimension_numbers<[1], [0], [0], [1], [0, 0, 1, 1], [], []>} : vector<32x64xbf16>, vector<64x128xbf16>, vector<32x128xf32> -> vector<32x128xf32>
    %c0_4 = arith.constant 0 : index
    %c0_5 = arith.constant 0 : index
    %7 = vector.load %arg5[%c0_4, %c0_5] : memref<1x128xf32, #tpu.memory_space<vmem>>, vector<1x128xf32>
    %8 = vector.broadcast %7 : vector<1x128xf32> to vector<32x128xf32>
    %9 = arith.addf %6, %8 : vector<32x128xf32>
    %cst_6 = arith.constant 5.000000e-01 : f32
    %10 = vector.broadcast %cst_6 : f32 to vector<32x128xf32>
    %11 = arith.mulf %10, %9 : vector<32x128xf32>
    %cst_7 = arith.constant 4.471500e-02 : f32
    %12 = vector.broadcast %cst_7 : f32 to vector<32x128xf32>
    %13 = arith.mulf %12, %9 : vector<32x128xf32>
    %14 = arith.mulf %13, %9 : vector<32x128xf32>
    %15 = arith.mulf %14, %9 : vector<32x128xf32>
    %16 = arith.addf %9, %15 : vector<32x128xf32>
    %cst_8 = arith.constant 0.797884583 : f32
    %17 = vector.broadcast %cst_8 : f32 to vector<32x128xf32>
    %18 = arith.mulf %17, %16 : vector<32x128xf32>
    %19 = math.tanh %18 : vector<32x128xf32>
    %cst_9 = arith.constant 1.000000e+00 : f32
    %20 = vector.broadcast %cst_9 : f32 to vector<32x128xf32>
    %21 = arith.addf %20, %19 : vector<32x128xf32>
    %22 = arith.mulf %11, %21 : vector<32x128xf32>
    %c0_10 = arith.constant 0 : index
    %c0_11 = arith.constant 0 : index
    %23 = vector.load %arg9[%c0_10, %c0_11] : memref<32x64xf32, #tpu.memory_space<vmem>>, vector<32x64xf32>
    %24 = arith.truncf %22 : vector<32x128xf32> to vector<32x128xbf16>
    %c0_12 = arith.constant 0 : index
    %c0_13 = arith.constant 0 : index
    %25 = vector.load %arg6[%c0_12, %c0_13] : memref<128x64xbf16, #tpu.memory_space<vmem>>, vector<128x64xbf16>
    %cst_14 = arith.constant dense<0.000000e+00> : vector<32x64xf32>
    %26 = tpu.matmul %24, %25, %cst_14 {dimension_numbers = #tpu.dot_dimension_numbers<[1], [0], [0], [1], [0, 0, 1, 1], [], []>} : vector<32x128xbf16>, vector<128x64xbf16>, vector<32x64xf32> -> vector<32x64xf32>
    %27 = arith.addf %23, %26 : vector<32x64xf32>
    %c0_15 = arith.constant 0 : index
    %c0_16 = arith.constant 0 : index
    %28 = vector.load %arg9[%c0_15, %c0_16] : memref<32x64xf32, #tpu.memory_space<vmem>>, vector<32x64xf32>
    tpu.vector_store %arg9[%c0_15, %c0_16], %27 {strides = array<i32>} : memref<32x64xf32, #tpu.memory_space<vmem>>, vector<32x64xf32>,
    %c0_i32_17 = arith.constant 0 : i32
    %29 = arith.cmpi eq, %arg1, %c0_i32_17 : i32
    %30 = arith.extui %29 : i1 to i32
    %c0_i32_18 = arith.constant 0 : i32
    %31 = arith.cmpi ne, %30, %c0_i32_18 : i32
    scf.if %31 {
      %c0_19 = arith.constant 0 : index
      %c0_20 = arith.constant 0 : index
      %32 = vector.load %arg9[%c0_19, %c0_20] : memref<32x64xf32, #tpu.memory_space<vmem>>, vector<32x64xf32>
      %c0_21 = arith.constant 0 : index
      %c0_22 = arith.constant 0 : index
      %33 = vector.load %arg7[%c0_21, %c0_22] : memref<1x64xf32, #tpu.memory_space<vmem>>, vector<1x64xf32>
      %34 = vector.broadcast %33 : vector<1x64xf32> to vector<32x64xf32>
      %35 = arith.addf %32, %34 : vector<32x64xf32>
      %c0_23 = arith.constant 0 : index
      %c0_24 = arith.constant 0 : index
      %36 = vector.load %arg8[%c0_23, %c0_24] : memref<32x64xf32, #tpu.memory_space<vmem>>, vector<32x64xf32>
      tpu.vector_store %arg8[%c0_23, %c0_24], %35 {strides = array<i32>} : memref<32x64xf32, #tpu.memory_space<vmem>>, vector<32x64xf32>,
    } else {
    }
    return
  }
  func.func @transform_0(%arg0: i32, %arg1: i32, %arg2: memref<1xi32, #tpu.memory_space<smem>>) -> (i32, i32) {
    %c0_i32 = arith.constant 0 : i32
    %c0_i32_0 = arith.constant 0 : i32
    return %arg0, %c0_i32 : i32, i32
  }
  func.func @transform_1(%arg0: i32, %arg1: i32, %arg2: memref<1xi32, #tpu.memory_space<smem>>) -> (i32, i32) {
    %c0_i32 = arith.constant 0 : i32
    %c0_i32_0 = arith.constant 0 : i32
    return %c0_i32, %arg1 : i32, i32
  }
  func.func @transform_2(%arg0: i32, %arg1: i32, %arg2: memref<1xi32, #tpu.memory_space<smem>>) -> (i32, i32) {
    %c0_i32 = arith.constant 0 : i32
    %c0_i32_0 = arith.constant 0 : i32
    return %c0_i32, %arg1 : i32, i32
  }
  func.func @transform_3(%arg0: i32, %arg1: i32, %arg2: memref<1xi32, #tpu.memory_space<smem>>) -> (i32, i32) {
    %c0_i32 = arith.constant 0 : i32
    %c0_i32_0 = arith.constant 0 : i32
    return %arg1, %c0_i32 : i32, i32
  }
  func.func @transform_4(%arg0: i32, %arg1: i32, %arg2: memref<1xi32, #tpu.memory_space<smem>>) -> (i32, i32) {
    %c0_i32 = arith.constant 0 : i32
    %c0_i32_0 = arith.constant 0 : i32
    %c0_i32_1 = arith.constant 0 : i32
    return %c0_i32, %c0_i32_0 : i32, i32
  }
  func.func @transform_5(%arg0: i32, %arg1: i32, %arg2: memref<1xi32, #tpu.memory_space<smem>>) -> (i32, i32) {
    %c0_i32 = arith.constant 0 : i32
    %c0_i32_0 = arith.constant 0 : i32
    return %arg0, %c0_i32 : i32, i32
  }
}

</mosaic_0001>

<bundles_post_ra>
// kernel: tpu_custom_call.1
= control target key start
LH: loop header
LB: loop body
LE: loop exit
PB: predicated region body
PF: predicated region fallthrough
CT: control target
= control target key end

     0   :  { %s495_s0 = inlined_call_operand.<no memory space> [shape: s32[1], index: 0, kind: input, shape index: {}]   ;;  %s496_s1 = inlined_call_operand.vmem [shape: f32[32,64], index: 1, kind: input, shape index: {}]   ;;  %s497_s2 = inlined_call_operand.vmem [shape: bf16[64,128], index: 2, kind: input, shape index: {}]   ;;  %s498_s3 = inlined_call_operand.vmem [shape: f32[1,128], index: 3, kind: input, shape index: {}]   ;;  %s499_s4 = inlined_call_operand.vmem [shape: bf16[128,64], index: 4, kind: input, shape index: {}]   ;;  %s500_s5 = inlined_call_operand.vmem [shape: f32[1,64], index: 5, kind: input, shape index: {}]   ;;  %s501_s6 = inlined_call_operand.hbm [shape: f32[32,64], index: 6, kind: output, shape index: {}]  }
   0x1   :  { %v324_v0 = vld [vmem:[%s497_s2 + $0x18] sm:$0xff]  ;;  %v323_v1 = vld [vmem:[%s497_s2 + $0x10] sm:$0xff] }
   0x2   :  { %86 = vmatpush.bf16.msra.mxu0 %v324_v0  ;;  %333 = vmatpush.bf16.msra.mxu3 %v324_v0 }
   0x3   :  { %12 = vsyncpa [#allocation6], 0  ;;  %v322_v2 = vld [vmem:[%s497_s2 + $0x8] sm:$0xff]  ;;  %v321_v3 = vld [vmem:[%s497_s2] sm:$0xff]  ;;  %vm28_vm0 = vcmask 523264   ;;  %v385_v30 = vmov 0.0  }
   0x4   :  { %v33_v4 = vld [vmem:[%s496_s1] sm:$0xff]  ;;  %v34_v5 = vld [vmem:[%s496_s1 + $0x8] sm:$0xff]  ;;  %v35_v6 = vld [vmem:[%s496_s1 + $0x10] sm:$0xff]  ;;  %29 = vst.msk [vmem:[#allocation2] sm:$0xff] %vm28_vm0, %v385_v30  ;;  %s259_s30 = sshll.u32 %s501_s6, 4  ;;  %s387_s7 = smov 128   ;;  %s260_s30 = int_to_ptr.hbm [resolvable:$true] %s259_s30 }
   0x5   :  { %v36_v7 = vld [vmem:[%s496_s1 + $0x18] sm:$0xff]  ;;  %v37_v8 = vpack.c.bf16 %v34_v5, %v33_v4  ;;  %v331_v11 = vld [vmem:[%s499_s4 + $0x30] sm:$0xff]  ;;  %v330_v12 = vld [vmem:[%s499_s4 + $0x28] sm:$0xff]  ;;  %30 = vst.msk [vmem:[#allocation2 + $0x8] sm:$0xff] %vm28_vm0, %v385_v30  ;;  %s388_s8 = smov 8  }
   0x6   :  { %87 = vmatpush.bf16.msra.mxu0 %v323_v1  ;;  %334 = vmatpush.bf16.msra.mxu3 %v323_v1  ;;  %v38_v9 = vpack.c.bf16 %v36_v7, %v35_v6  ;;  %v332_v10 = vld [vmem:[%s499_s4 + $0x38] sm:$0xff]  ;;  %v329_v13 = vld [vmem:[%s499_s4 + $0x20] sm:$0xff]  ;;  %v327_v15 = vld [vmem:[%s499_s4 + $0x10] sm:$0xff]  ;;  %31 = vst.msk [vmem:[#allocation2 + $0x10] sm:$0xff] %vm28_vm0, %v385_v30 }
   0x7   :  { %207 = vmatpush.bf16.msra.mxu1 %v332_v10  ;;  %337 = vmatpush.bf16.msra.mxu2 %v332_v10  ;;  %v328_v14 = vld [vmem:[%s499_s4 + $0x18] sm:$0xff]  ;;  %v326_v16 = vld [vmem:[%s499_s4 + $0x8] sm:$0xff]  ;;  %v325_v17 = vld [vmem:[%s499_s4] sm:$0xff]  ;;  %32 = vst.msk [vmem:[#allocation2 + $0x18] sm:$0xff] %vm28_vm0, %v385_v30 }
   0x8   :  { %v349_v18 = vld [vmem:[%s498_s3] ss:$0 sm:$0xff] }
   0x9   :  { %v350_v6 = vld [vmem:[%s500_s5] ss:$0 sm:$0xff]  ;;  %s386_s5 = smov [#allocation5]  }
   0xa   :  { %88 = vmatpush.bf16.msra.mxu0 %v322_v2  ;;  %335 = vmatpush.bf16.msra.mxu3 %v322_v2  ;;  %s257_s27 = sshll.u32 %s386_s5, 4  ;;  %s258_s27 = int_to_ptr.vmem [resolvable:$true] %s257_s27 }
   0xb   :  { %208 = vmatpush.bf16.msra.mxu1 %v331_v11  ;;  %338 = vmatpush.bf16.msra.mxu2 %v331_v11  ;;  %v137_v2 = vld [vmem:[#allocation2] sm:$0xff] }
   0xc   :  { %v138_v5 = vld [vmem:[#allocation2 + $0x8] sm:$0xff] }
   0xe   :  { %89 = vmatpush.bf16.msra.mxu0 %v321_v3  ;;  %336 = vmatpush.bf16.msra.mxu3 %v321_v3 }
   0xf   :  { %209 = vmatpush.bf16.msra.mxu1 %v330_v12  ;;  %339 = vmatpush.bf16.msra.mxu2 %v330_v12 }
  0x11   :  { %287 = vmatmul.msk.bf16.vlgmr.msra.gmra.mxu0 %vm28_vm0, %v37_v8  ;;  %288 = vmatmul.msk.bf16.vlgmr.msra.gmra.mxu3 %vm28_vm0, %v38_v9  ;;  %v139_v9 = vld [vmem:[#allocation2 + $0x10] sm:$0xff] }
  0x13   :  { %210 = vmatpush.bf16.msra.mxu1 %v329_v13  ;;  %340 = vmatpush.bf16.msra.mxu2 %v329_v13 }
  0x17   :  { %211 = vmatpush.bf16.msra.mxu1 %v328_v14  ;;  %341 = vmatpush.bf16.msra.mxu2 %v328_v14  ;;  %v140_v14 = vld [vmem:[#allocation2 + $0x18] sm:$0xff] }
  0x1b   :  { %212 = vmatpush.bf16.msra.mxu1 %v327_v15  ;;  %342 = vmatpush.bf16.msra.mxu2 %v327_v15 }
  0x1f   :  { %213 = vmatpush.bf16.msra.mxu1 %v326_v16  ;;  %343 = vmatpush.bf16.msra.mxu2 %v326_v16 }
  0x23   :  { %214 = vmatpush.bf16.msra.mxu1 %v325_v17  ;;  %344 = vmatpush.bf16.msra.mxu2 %v325_v17 }
  0x8e   :  { %v91_v19 = vpop.f32.mrf.mxu0 }
  0x8f   :  { %v92_v20 = vadd.f32 %v349_v18, %v91_v19 }
  0x91   :  { %v105_v21 = vmul.f32 0.044715, %v92_v20  ;;  %v101_v51 = vmul.f32 0.5, %v92_v20 }
  0x93   :  { %v109_v22 = vmul.f32 %v105_v21, %v92_v20 }
  0x94   :  { %v96_v23 = vpop.f32.mrf.mxu3 }
  0x95   :  { %v97_v24 = vadd.f32 %v349_v18, %v96_v23  ;;  %v113_v25 = vmul.f32 %v109_v22, %v92_v20 }
  0x96   :  { %v93_v26 = vpop.f32.mrf.mxu0 }
  0x97   :  { %v107_v27 = vmul.f32 0.044715, %v97_v24  ;;  %v94_v28 = vadd.f32 %v349_v18, %v93_v26  ;;  %v117_v29 = vadd.f32 %v113_v25, %v92_v20  ;;  %v103_v60 = vmul.f32 0.5, %v97_v24 }
  0x99   :  { %v106_v31 = vmul.f32 0.044715, %v94_v28  ;;  %v111_v32 = vmul.f32 %v107_v27, %v97_v24  ;;  %v121_v34 = vmul.f32 0.7978846, %v117_v29  ;;  %v102_v52 = vmul.f32 0.5, %v94_v28 }
  0x9b   :  { %v110_v33 = vmul.f32 %v106_v31, %v94_v28  ;;  %v115_v35 = vmul.f32 %v111_v32, %v97_v24  ;;  %351 = vtanh.f32 %v121_v34 }
  0x9c   :  { %v98_v36 = vpop.f32.mrf.mxu3 }
  0x9d   :  { %v99_v37 = vadd.f32 %v349_v18, %v98_v36  ;;  %v114_v38 = vmul.f32 %v110_v33, %v94_v28  ;;  %v119_v39 = vadd.f32 %v115_v35, %v97_v24 }
  0x9f   :  { %v108_v40 = vmul.f32 0.044715, %v99_v37  ;;  %v118_v41 = vadd.f32 %v114_v38, %v94_v28  ;;  %v123_v44 = vmul.f32 0.7978846, %v119_v39  ;;  %v104_v61 = vmul.f32 0.5, %v99_v37 }
  0xa1   :  { %v122_v42 = vmul.f32 0.7978846, %v118_v41  ;;  %v112_v43 = vmul.f32 %v108_v40, %v99_v37  ;;  %v352_v46 = vpop.eup %351 }
  0xa2   :  { %v129_v49 = vadd.f32 1.0, %v352_v46 }
  0xa3   :  { %353 = vtanh.f32 %v122_v42  ;;  %v116_v45 = vmul.f32 %v112_v43, %v99_v37 }
  0xa4   :  { %355 = vtanh.f32 %v123_v44  ;;  %v133_v55 = vmul.f32 %v129_v49, %v101_v51 }
  0xa5   :  { %v120_v47 = vadd.f32 %v116_v45, %v99_v37 }
  0xa7   :  { %v124_v48 = vmul.f32 0.7978846, %v120_v47 }
  0xa9   :  { %v354_v50 = vpop.eup %353  ;;  %357 = vtanh.f32 %v124_v48 }
  0xaa   :  { %v130_v53 = vadd.f32 1.0, %v354_v50  ;;  %v356_v54 = vpop.eup %355 }
  0xab   :  { %v131_v58 = vadd.f32 1.0, %v356_v54 }
  0xac   :  { %v134_v56 = vmul.f32 %v130_v53, %v102_v52 }
  0xad   :  { %v135_v63 = vmul.f32 %v131_v58, %v103_v60 }
  0xae   :  { %v141_v57 = vpack.c.bf16 %v134_v56, %v133_v55 }
  0xaf   :  { %v358_v59 = vpop.eup %357 }
  0xb0   :  { %215 = vmatmul.bf16.vlgmr.msra.gmra.mxu1 %v141_v57  ;;  %v132_v62 = vadd.f32 1.0, %v358_v59 }
  0xb2   :  { %v136_v0 = vmul.f32 %v132_v62, %v104_v61 }
  0xb4   :  { %v142_v1 = vpack.c.bf16 %v136_v0, %v135_v63 }
  0xb6   :  { %220 = vmatmul.bf16.vlgmr.msra.gmra.mxu2 %v142_v1 }
 0x12d   :  { %v216_v3 = vpop.f32.mrf.mxu1 }
 0x12e   :  { %v226_v4 = vadd.f32 %v216_v3, %v137_v2 }
 0x130   :  { %230 = vst.msk [vmem:[#allocation2] sm:$0xff] %vm28_vm0, %v226_v4 }
 0x135   :  { %v218_v7 = vpop.f32.mrf.mxu1 }
 0x136   :  { %v227_v8 = vadd.f32 %v218_v7, %v138_v5 }
 0x137   :  { %v237_v10 = vld [vmem:[#allocation2] sm:$0xff] }
 0x138   :  { %231 = vst.msk [vmem:[#allocation2 + $0x8] sm:$0xff] %vm28_vm0, %v227_v8  ;;  %v245_v11 = vadd.f32 %v350_v6, %v237_v10 }
 0x139   :  { %v221_v12 = vpop.f32.mrf.mxu2 }
 0x13a   :  { %v228_v13 = vadd.f32 %v221_v12, %v139_v9  ;;  %249 = vst.msk [vmem:[#allocation5] sm:$0xff] %vm28_vm0, %v245_v11 }
 0x13c   :  { %232 = vst.msk [vmem:[#allocation2 + $0x10] sm:$0xff] %vm28_vm0, %v228_v13 }
 0x13f   :  { %v238_v15 = vld [vmem:[#allocation2 + $0x8] sm:$0xff] }
 0x140   :  { %v246_v16 = vadd.f32 %v350_v6, %v238_v15 }
 0x141   :  { %v223_v17 = vpop.f32.mrf.mxu2 }
 0x142   :  { %v229_v18 = vadd.f32 %v223_v17, %v140_v14  ;;  %250 = vst.msk [vmem:[#allocation5 + $0x8] sm:$0xff] %vm28_vm0, %v246_v16 }
 0x143   :  { %v239_v19 = vld [vmem:[#allocation2 + $0x10] sm:$0xff] }
 0x144   :  { %233 = vst.msk [vmem:[#allocation2 + $0x18] sm:$0xff] %vm28_vm0, %v229_v18  ;;  %v247_v20 = vadd.f32 %v350_v6, %v239_v19 }
 0x146   :  { %251 = vst.msk [vmem:[#allocation5 + $0x10] sm:$0xff] %vm28_vm0, %v247_v20 }
 0x14b   :  { %v240_v21 = vld [vmem:[#allocation2 + $0x18] sm:$0xff] }
 0x14c   :  { %v248_v22 = vadd.f32 %v350_v6, %v240_v21 }
 0x14e   :  { %252 = vst.msk [vmem:[#allocation5 + $0x18] sm:$0xff] %vm28_vm0, %v248_v22 }
 0x14f   :  { %265 = dma.vmem_to_hbm [thread:$0]  %s258_s27, 512, %s260_s30, [#allocation6], %s387_s7, %s387_s7, %s388_s8  }
 0x150   :  { %383 = dma.done.wait [#allocation6], 512  }
 0x151   :  { %384 = vsyncadd [#allocation6], 4294966784 }
 0x152   :  { %270 = vsyncpa [#allocation6], 1 }

</bundles_post_ra>
